<compile_context>
chip_gen: v5e
topology: v5e:2x2
jax: 0.10.0
libtpu: 0.0.40
codegen_flags: <defaults>
</compile_context>

<pallas_src>
import functools
import math

import jax
import jax.numpy as jnp
import numpy as np
from jax.experimental import pallas as pl
from jax.experimental.pallas import tpu as pltpu


def build_pe(max_seq_len: int, d_model: int) -> jnp.ndarray:
    """Vectorized sinusoidal table, numerically identical to the PyTorch loop."""
    assert d_model % 2 == 0, "d_model must be even (reference writes pe[:, i+1])"
    pos = np.arange(max_seq_len, dtype=np.float64)[:, None]        # (S, 1)
    even_i = np.arange(0, d_model, 2, dtype=np.float64)[None, :]   # (1, D/2)
    angle = pos / (1000.0 ** (2.0 * even_i / d_model))             # (S, D/2)
    pe = np.zeros((max_seq_len, d_model), dtype=np.float32)
    pe[:, 0::2] = np.sin(angle)
    pe[:, 1::2] = np.cos(angle)
    return jnp.asarray(pe[None, :, :])                             # (1, S, D)


def _pos_encoder_kernel(x_ref, pe_ref, o_ref, *, scale):
    # Pure elementwise hot path; pe broadcasts over the batch block dim.
    x = x_ref[...].astype(jnp.float32)
    pe = pe_ref[...].astype(jnp.float32)
    o_ref[...] = (x * scale + pe).astype(o_ref.dtype)


def _pick_block_bytes() -> int:
    """Per-generation target block size (bytes per stream per block)."""
    try:
        kind = jax.devices()[0].device_kind.lower()
    except Exception:
        kind = ""
    if "v5 lite" in kind or "v5e" in kind or "v5lite" in kind:
        # ~820 GB/s HBM: per-step overhead already <10% at 2 MiB; keeps the
        # double-buffered footprint well under the 16 MiB scoped default.
        return 2 << 20
    if "v6" in kind or "7" in kind:
        # v6e (~1.4 TB/s) / v7x (~3.2 TB/s per TC): 4 MiB amortizes the
        # ~0.35 us per-grid-step overhead; 3 streams x 2 bufs x 4 MiB = 24 MiB
        # still fits the 32 MiB scoped-VMEM default.
        return 4 << 20
    return 2 << 20  # unknown generation: conservative


def _choose_tile_rows(n_rows: int, target_rows: int, sub: int,
                      itemsize: int) -> tuple[int, int]:
    """Pick a sublane-aligned row tile tR and the padded row count.

    Minimizes an HBM-traffic + per-step-overhead cost model instead of
    requiring exact divisors (avoids degenerate tiny tiles / giant blocks).
    """
    rows_al = pl.cdiv(n_rows, sub) * sub
    max_tr = max(sub, min(target_rows, rows_al))
    overhead_bytes = 350_000  # ~0.35 us/step at ~1 TB/s, in "equivalent bytes"
    best_tr, best_cost = sub, None
    tr = sub
    while tr <= max_tr:
        steps = pl.cdiv(rows_al, tr)
        # x read + out write (incl. tail padding) + fixed per-step overhead.
        cost = steps * (2 * tr * 128 * itemsize + overhead_bytes)
        if best_cost is None or cost < best_cost:
            best_tr, best_cost = tr, cost
        tr += sub
    rows_pad = pl.cdiv(rows_al, best_tr) * best_tr
    return best_tr, rows_pad


def pos_encoder(x: jnp.ndarray, pe: jnp.ndarray, d_model: int) -> jnp.ndarray:
    """x: (B, S, D); pe: (1, max_seq_len, D) float32 table."""
    B, S, D = x.shape
    assert D == d_model, f"x feature dim {D} != d_model {d_model}"
    assert S <= pe.shape[1], f"seq_len {S} exceeds max_seq_len {pe.shape[1]}"
    scale = float(math.sqrt(d_model))

    itemsize = int(x.dtype.itemsize)
    # Native sublane count of a (sub, 128) hardware tile for this dtype:
    # 8 for f32, 16 for bf16, 32 for int8.
    sub = 8 * max(1, 4 // itemsize)

    # Flatten (S, D) into dense 128-lane rows so every block is a stack of
    # full (sub, 128) tiles: lane- and sublane-dense loads/stores.
    L = S * D
    n_rows = pl.cdiv(L, 128)
    block_bytes = _pick_block_bytes()
    target_rows = max(sub, block_bytes // (128 * itemsize))
    tR, rows_pad = _choose_tile_rows(n_rows, target_rows, sub, itemsize)
    L_pad = rows_pad * 128
    n_r = rows_pad // tR

    def to_rows(a, rows):  # (N, ...) -> zero-padded (N, rows, 128)
        a = a.reshape(a.shape[0], -1)
        if a.shape[1] != rows * 128:
            a = jnp.pad(a, ((0, 0), (0, rows * 128 - a.shape[1])))
        return a.reshape(a.shape[0], rows, 128)

    x_rows = to_rows(x, rows_pad)                                  # (B, R, 128)
    # Pass pe in x's dtype (upcast in-kernel) so the broadcast stream doesn't
    # cost extra HBM bandwidth when x is low precision.
    pe_rows = to_rows(pe[:, :S, :].astype(x.dtype), rows_pad)      # (1, R, 128)

    cost = pl.CostEstimate(
        flops=2 * B * L,
        transcendentals=0,
        bytes_accessed=2 * B * L * itemsize + L * itemsize,
    )
    kernel = functools.partial(_pos_encoder_kernel, scale=scale)

    def make_call(pe_single_buffer: bool):
        if pe_single_buffer:
            # pe's block index only changes on the outer grid axis; a single
            # buffer frees one block of VMEM for the x/out streams.
            pe_spec = pl.BlockSpec((1, tR, 128), lambda r, b: (0, r, 0),
                                   pipeline_mode=pl.Buffered(1))
        else:
            pe_spec = pl.BlockSpec((1, tR, 128), lambda r, b: (0, r, 0))
        return pl.pallas_call(
            kernel,
            out_shape=jax.ShapeDtypeStruct((B, rows_pad, 128), x.dtype),
            grid_spec=pl.GridSpec(
                # Batch innermost: pe's block index is constant across the
                # inner steps, so it is re-DMA'd only n_r times, not n_r * B.
                grid=(n_r, B),
                in_specs=[
                    pl.BlockSpec((1, tR, 128), lambda r, b: (b, r, 0)),
                    pe_spec,
                ],
                out_specs=pl.BlockSpec((1, tR, 128), lambda r, b: (b, r, 0)),
            ),
            compiler_params=pltpu.CompilerParams(
                # Both axes independent -> megacore may shard either one.
                dimension_semantics=("parallel", "parallel"),
            ),
            cost_estimate=cost,
        )

    try:
        out_rows = make_call(pe_single_buffer=True)(x_rows, pe_rows)
        out_rows = jax.block_until_ready(out_rows)
    except Exception:
        # Fallback if this Pallas version rejects single-buffered block specs.
        out_rows = make_call(pe_single_buffer=False)(x_rows, pe_rows)

    # TODO(synk): for very small B, synthesize pe in-kernel (iota + sin/cos on
    # the EUP) to drop the pe HBM read stream entirely; kept as a table here
    # to match the PyTorch buffer bit-for-bit.
    return out_rows.reshape(B, L_pad)[:, :L].reshape(B, S, D)


if __name__ == "__main__":
    # Small shapes consistent with the module: batch=2, seq=8, d_model=32.
    B, S, D_MODEL = 2, 8, 32
    MAX_SEQ_LEN = 16

    key = jax.random.PRNGKey(0)
    x = jax.random.normal(key, (B, S, D_MODEL), dtype=jnp.float32)
    pe = build_pe(MAX_SEQ_LEN, D_MODEL)

    out = pos_encoder(x, pe, D_MODEL)
    out = jax.block_until_ready(out)

    # Reference check in plain JAX.
    ref = x * math.sqrt(D_MODEL) + pe[:, :S, :]
    np.testing.assert_allclose(np.asarray(out), np.asarray(ref), rtol=1e-6, atol=1e-6)

    print("KERNEL_OK")
</pallas_src>

<mosaic_0001>
module attributes {stable_mosaic.version = 11 : i64} {
  func.func @_pos_encoder_kernel(%arg0: i32, %arg1: i32, %arg2: memref<1x8x128xf32, #tpu.memory_space<vmem>>, %arg3: memref<1x8x128xf32, #tpu.memory_space<vmem>>, %arg4: memref<1x8x128xf32, #tpu.memory_space<vmem>>) attributes {dimension_semantics = [#tpu.dimension_semantics<parallel>, #tpu.dimension_semantics<parallel>], iteration_bounds = array<i64: 1, 2>, scalar_prefetch = 0 : i64, scratch_operands = 0 : i64, tpu.core_type = #tpu.core_type<tc>, window_params = [{transform_indices = @transform_0, window_bounds = array<i64: 1, 8, 128>}, {pipeline_mode = #tpu.pipeline_mode<synchronous>, transform_indices = @transform_1, window_bounds = array<i64: 1, 8, 128>}, {transform_indices = @transform_2, window_bounds = array<i64: 1, 8, 128>}]} {
    %c0 = arith.constant 0 : index
    %c0_0 = arith.constant 0 : index
    %c0_1 = arith.constant 0 : index
    %0 = vector.load %arg2[%c0, %c0_0, %c0_1] : memref<1x8x128xf32, #tpu.memory_space<vmem>>, vector<1x8x128xf32>
    %c0_2 = arith.constant 0 : index
    %c0_3 = arith.constant 0 : index
    %c0_4 = arith.constant 0 : index
    %1 = vector.load %arg3[%c0_2, %c0_3, %c0_4] : memref<1x8x128xf32, #tpu.memory_space<vmem>>, vector<1x8x128xf32>
    %cst = arith.constant 5.65685415 : f32
    %2 = vector.broadcast %cst : f32 to vector<1x8x128xf32>
    %3 = arith.mulf %0, %2 : vector<1x8x128xf32>
    %4 = arith.addf %3, %1 : vector<1x8x128xf32>
    %c0_5 = arith.constant 0 : index
    %c0_6 = arith.constant 0 : index
    %c0_7 = arith.constant 0 : index
    %5 = vector.load %arg4[%c0_5, %c0_6, %c0_7] : memref<1x8x128xf32, #tpu.memory_space<vmem>>, vector<1x8x128xf32>
    tpu.vector_store %arg4[%c0_5, %c0_6, %c0_7], %4 {strides = array<i32>} : memref<1x8x128xf32, #tpu.memory_space<vmem>>, vector<1x8x128xf32>,
    return
  }
  func.func @transform_0(%arg0: i32, %arg1: i32) -> (i32, i32, i32) {
    %c0_i32 = arith.constant 0 : i32
    %c0_i32_0 = arith.constant 0 : i32
    return %arg1, %arg0, %c0_i32 : i32, i32, i32
  }
  func.func @transform_1(%arg0: i32, %arg1: i32) -> (i32, i32, i32) {
    %c0_i32 = arith.constant 0 : i32
    %c0_i32_0 = arith.constant 0 : i32
    %c0_i32_1 = arith.constant 0 : i32
    return %c0_i32, %arg0, %c0_i32_0 : i32, i32, i32
  }
  func.func @transform_2(%arg0: i32, %arg1: i32) -> (i32, i32, i32) {
    %c0_i32 = arith.constant 0 : i32
    %c0_i32_0 = arith.constant 0 : i32
    return %arg1, %arg0, %c0_i32 : i32, i32, i32
  }
}

module attributes {stable_mosaic.version = 11 : i64} {
  func.func @_pos_encoder_kernel(%arg0: i32, %arg1: i32, %arg2: memref<1x8x128xf32, #tpu.memory_space<vmem>>, %arg3: memref<1x8x128xf32, #tpu.memory_space<vmem>>, %arg4: memref<1x8x128xf32, #tpu.memory_space<vmem>>) attributes {dimension_semantics = [#tpu.dimension_semantics<parallel>, #tpu.dimension_semantics<parallel>], iteration_bounds = array<i64: 1, 2>, scalar_prefetch = 0 : i64, scratch_operands = 0 : i64, tpu.core_type = #tpu.core_type<tc>, window_params = [{transform_indices = @transform_0, window_bounds = array<i64: 1, 8, 128>}, {transform_indices = @transform_1, window_bounds = array<i64: 1, 8, 128>}, {transform_indices = @transform_2, window_bounds = array<i64: 1, 8, 128>}]} {
    %c0 = arith.constant 0 : index
    %c0_0 = arith.constant 0 : index
    %c0_1 = arith.constant 0 : index
    %0 = vector.load %arg2[%c0, %c0_0, %c0_1] : memref<1x8x128xf32, #tpu.memory_space<vmem>>, vector<1x8x128xf32>
    %c0_2 = arith.constant 0 : index
    %c0_3 = arith.constant 0 : index
    %c0_4 = arith.constant 0 : index
    %1 = vector.load %arg3[%c0_2, %c0_3, %c0_4] : memref<1x8x128xf32, #tpu.memory_space<vmem>>, vector<1x8x128xf32>
    %cst = arith.constant 5.65685415 : f32
    %2 = vector.broadcast %cst : f32 to vector<1x8x128xf32>
    %3 = arith.mulf %0, %2 : vector<1x8x128xf32>
    %4 = arith.addf %3, %1 : vector<1x8x128xf32>
    %c0_5 = arith.constant 0 : index
    %c0_6 = arith.constant 0 : index
    %c0_7 = arith.constant 0 : index
    %5 = vector.load %arg4[%c0_5, %c0_6, %c0_7] : memref<1x8x128xf32, #tpu.memory_space<vmem>>, vector<1x8x128xf32>
    tpu.vector_store %arg4[%c0_5, %c0_6, %c0_7], %4 {strides = array<i32>} : memref<1x8x128xf32, #tpu.memory_space<vmem>>, vector<1x8x128xf32>,
    return
  }
  func.func @transform_0(%arg0: i32, %arg1: i32) -> (i32, i32, i32) {
    %c0_i32 = arith.constant 0 : i32
    %c0_i32_0 = arith.constant 0 : i32
    return %arg1, %arg0, %c0_i32 : i32, i32, i32
  }
  func.func @transform_1(%arg0: i32, %arg1: i32) -> (i32, i32, i32) {
    %c0_i32 = arith.constant 0 : i32
    %c0_i32_0 = arith.constant 0 : i32
    %c0_i32_1 = arith.constant 0 : i32
    return %c0_i32, %arg0, %c0_i32_0 : i32, i32, i32
  }
  func.func @transform_2(%arg0: i32, %arg1: i32) -> (i32, i32, i32) {
    %c0_i32 = arith.constant 0 : i32
    %c0_i32_0 = arith.constant 0 : i32
    return %arg1, %arg0, %c0_i32 : i32, i32, i32
  }
}

</mosaic_0001>

<bundles_post_ra>
// kernel: tpu_custom_call.1
= control target key start
LH: loop header
LB: loop body
LE: loop exit
PB: predicated region body
PF: predicated region fallthrough
CT: control target
= control target key end

     0   :  { %7 = vsyncpa [#allocation3], 0  ;;  %s715_s0 = inlined_call_operand.hbm [shape: f32[2,8,128], index: 0, kind: input, shape index: {}]   ;;  %s716_s1 = inlined_call_operand.hbm [shape: f32[1,8,128], index: 1, kind: input, shape index: {}]   ;;  %s717_s2 = inlined_call_operand.hbm [shape: f32[2,8,128], index: 2, kind: output, shape index: {}]  }
   0x1   :  { %9 = vsyncpa [#allocation3 + $0x1], 0 }
   0x2   :  { %10 = vsyncpa [#allocation6], 0 }
   0x3   :  { %11 = vsyncpa [#allocation4], 0 }
   0x4   :  { %13 = vsyncpa [#allocation4 + $0x1], 0  ;;  %s566_s9 = smov 0   ;;  %s568_s10 = smov 0  }
   0x5   :  { %s570_s11 = smov 0   ;;  %s572_s12 = smov 0  }
   0x6   :  { %s574_s13 = smov 0   ;;  %s576_s14 = smov 0  }
   0x7 LB: > { %s314_s15 = sadd.s32 4294967295, %s548_s14   ;;  %s315_s16 = sadd.s32 4294967294, %s548_s14   ;;  %s548_s14 = sphi %s576_s14, %s19_s14   ;;  %s544_s13 = sphi %s574_s13, %s729_s13   ;;  %s540_s12 = sphi %s572_s12, %s728_s12   ;;  %s536_s11 = sphi %s570_s11, %s727_s11   ;;  %s532_s10 = sphi %s568_s10, %s726_s10   ;;  %s528_s9 = sphi %s566_s9, %s725_s9  }
   0x8   : > { %p53_p0 = scmp.ne.s32.totalorder %s532_s10, %s528_s9  ;;  %p600_p1 = scmp.eq.s32.totalorder %s314_s15, 0 }
   0x9   : > { %p604_p2 = scmp.eq.s32.totalorder %s314_s15, 1  ;;  %p111_p3 = scmp.eq.s32.totalorder %s315_s16, 1 }
   0xa   : > { %p610_p4 = por %p600_p1, %p53_p0  ;;  %p316_p5 = scmp.ge.s32.totalorder %s548_s14, 1 }
   0xb   : > { %p615_p6 = por %p111_p3, %p53_p0  ;;  %p118_p7 = scmp.lt.s32.totalorder %s548_s14, 3 }
   0xc   : > { %s132_s23 = sshll.u32 %s716_s1, 4  ;;  %p318_p9 = scmp.ge.s32.totalorder %s548_s14, 2  ;;  %s133_s23 = int_to_ptr.hbm [resolvable:$true] %s132_s23 }
   0xd   : > { %p623_p8 = pnand %p316_p5, %p118_p7  ;;  %s550_s25 = smov [#allocation5]  }
   0xe   : > { %s134_s26 = sshll.u32 %s550_s25, 4  ;;  %s28_s27 = sadd.s32 1, %s544_s13  ;;  %s135_s26 = int_to_ptr.vmem [resolvable:$true] %s134_s26 }
   0xf   : > { %p337_p10 = pneg %p623_p8  ;;  %p29_p12 = scmp.ge.s32.totalorder %s28_s27, 2 }
  0x10   : > { %s40_s28 = sadd.s32 1, %s536_s11  ;;  %p47_p13 = scmp.ne.s32.totalorder %s536_s11, %s532_s10 }
  0x11   : > { %p338_p11 = pnand %p337_p10, %p600_p1  ;;  %p48_p0 = scmp.eq.s32.totalorder %s548_s14, 0 }
  0x12   : > { %s731_s27 = smov (%p29_p12, %s28_s27), 0  ;;  %p645_p5 = por %p604_p2, %p47_p13 }
  0x13   : > { %340 = dma.hbm_to_vmem [thread:$0]  (!%p338_p11), %s133_s23, 128, %s135_s26, [#allocation6]  }
  0x14   : > { %p639_p3 = por %p48_p0, %p47_p13  ;;  %s35_s3 = ssub.s32 %s544_s13, %s731_s27 }
  0x15   : > { %p350_p7 = scmp.lt.s32.totalorder %s548_s14, 2  ;;  %p38_p10 = scmp.eq.s32.totalorder %s35_s3, 0 }
  0x16   : > { %s145_s4 = sand.u32 1, %s536_s11   ;;  %s320_s7 = sshll.u32 %s544_s13, 3 }
  0x17   : > { %s319_s5 = sshll.u32 %s145_s4, 3  ;;  %s154_s16 = scalar_lea.hbm %s715_s0, %s320_s7 }
  0x18   : > { %s654_s6 = scalar_select %p38_p10, %s536_s11, %s40_s28  }
  0x19   : > { %s149_s21 = scalar_lea.vmem [#allocation2], %s319_s5  ;;  %s156_s18 = sshll.u32 %s154_s16, 4  ;;  %s157_s18 = int_to_ptr.hbm [resolvable:$true] %s156_s18 }
  0x1a   : > { %s158_s22 = sshll.u32 %s149_s21, 4  ;;  %p342_p2 = pnand %p350_p7, %p639_p3  ;;  %s159_s22 = int_to_ptr.vmem [resolvable:$true] %s158_s22 }
  0x1b   : > { %s146_s23 = scalar_lea.sflag [#allocation3], %s145_s4  ;;  %167 = sbr.rel (%p623_p8) target bundleno = 50 (0x32), region = 28 }
  0x1c   : > { %344 = dma.hbm_to_vmem [thread:$0]  (!%p342_p2), %s157_s18, 128, %s159_s22, %s146_s23  }
  0x1d   : > { %s665_s25 = sand.u32 (!%p623_p8), 1, %s532_s10  }
  0x1e   : > { %s322_s26 = sshll.u32 (!%p623_p8), %s665_s25, 3  ;;  %s170_s28 = scalar_lea.sflag (!%p623_p8), [#allocation3], %s665_s25 }
  0x1f   : > { %s173_s3 = scalar_lea.vmem (!%p623_p8), [#allocation2], %s322_s26 }
  0x20   : > { %515 = dma.done.wait (%p610_p4), %s170_s28, 128  }
  0x21   : > { %517 = vsyncadd (%p610_p4), %s170_s28, 4294967168 }
  0x22   : > { %519 = dma.done.wait (%p600_p1), [#allocation6], 128  }
  0x23   : > { %521 = vsyncadd (%p600_p1), [#allocation6], 4294967168  ;;  %s326_s24 = sshll.u32 %s540_s12, 3  ;;  %v200_v0 = vld [vmem:[%s173_s3] sm:$0xff]  ;;  %v201_v1 = vld [vmem:[#allocation5] sm:$0xff]  ;;  %s199_s7 = scalar_lea.vmem [#allocation7], %s322_s26 }
  0x24   : > { %s217_s5 = scalar_lea.hbm %s717_s2, %s326_s24  ;;  %s219_s8 = sshll.u32 %s199_s7, 4  ;;  %v202_v2 = vmul.f32 5.656854, %v200_v0  ;;  %s220_s8 = int_to_ptr.vmem [resolvable:$true] %s219_s8 }
  0x25   : > { %s221_s19 = sshll.u32 %s217_s5, 4  ;;  %s206_s17 = scalar_lea.sflag [#allocation4], %s665_s25  ;;  %s222_s19 = int_to_ptr.hbm [resolvable:$true] %s221_s19 }
  0x26   : > { %v203_v3 = vadd.f32 %v202_v2, %v201_v1  ;;  %s476_s15 = sshra.s32 %s222_s19, 4  ;;  %s482_s22 = scalar_lea.hbm %s717_s2, 16  ;;  %s477_s15 = int_to_ptr.hbm [resolvable:$true] %s476_s15 }
  0x27   : > { %s478_s16 = scalar_lea.hbm %s477_s15, 8  ;;  %p483_p11 = scmp.lt.s32.totalorder %s477_s15, %s717_s2 }
  0x28   : > { %204 = vst [vmem:[%s199_s7] sm:$0xff] %v203_v3  ;;  %p479_p1 = scmp.ne.s32.totalorder %s477_s15, %s478_s16  ;;  %p484_p12 = scmp.lt.s32.totalorder %s482_s22, %s478_s16 }
  0x2a   : > { %p480_p4 = pnand %p479_p1, %p645_p5  ;;  %p485_p13 = por %p484_p12, %p483_p11 }
  0x2c   : > { %p481_p8 = pneg %p480_p4 }
  0x2e   : > { %p486_p0 = pnand %p485_p13, %p481_p8 }
  0x30   : > { %489 = shalt.err (!%p486_p0)
}
  0x31   : > { %335 = dma.vmem_to_hbm [thread:$0]  (%p645_p5), %s220_s8, 128, %s222_s19, %s206_s17  }
  0x32 PF: > { %s233_s25 = sand.u32 1, %s528_s9   ;;  %p346_p3 = pnand %p318_p9, %p615_p6 }
  0x33   : > { %s234_s26 = scalar_lea.sflag [#allocation4], %s233_s25 }
  0x34   : > { %p347_p7 = pneg %p346_p3 }
  0x36   : > { %523 = dma.done.wait (%p347_p7), %s234_s26, 128  }
  0x37   : > { %525 = vsyncadd (%p347_p7), %s234_s26, 4294967168  ;;  %s19_s14 = sadd.s32 1, %s548_s14   ;;  %s725_s9 = smov %s532_s10 }
  0x38   : > { %p16_p10 = scmp.ge.s32.totalorder %s19_s14, 4   ;;  %s726_s10 = smov %s536_s11 }
  0x39   : > { %s727_s11 = smov %s654_s6  ;;  %s728_s12 = smov %s544_s13 }
  0x3a   : > { %s729_s13 = smov %s731_s27  ;;  %18 = sbr.rel (!%p16_p10) target bundleno = 7 (0x7), region = 78 }
  0x3f   :  { %240 = vsyncpa [#allocation3], 1 }
  0x40   :  { %242 = vsyncpa [#allocation3 + $0x1], 1 }
  0x41   :  { %243 = vsyncpa [#allocation6], 1 }
  0x42   :  { %244 = vsyncpa [#allocation4], 1 }
  0x43   :  { %246 = vsyncpa [#allocation4 + $0x1], 1 }

// kernel: tpu_custom_call.1
= control target key start
LH: loop header
LB: loop body
LE: loop exit
PB: predicated region body
PF: predicated region fallthrough
CT: control target
= control target key end

     0   :  { %7 = vsyncpa [#allocation3], 0  ;;  %s715_s0 = inlined_call_operand.hbm [shape: f32[2,8,128], index: 0, kind: input, shape index: {}]   ;;  %s716_s1 = inlined_call_operand.hbm [shape: f32[1,8,128], index: 1, kind: input, shape index: {}]   ;;  %s717_s2 = inlined_call_operand.hbm [shape: f32[2,8,128], index: 2, kind: output, shape index: {}]  }
   0x1   :  { %9 = vsyncpa [#allocation3 + $0x1], 0 }
   0x2   :  { %10 = vsyncpa [#allocation6], 0 }
   0x3   :  { %11 = vsyncpa [#allocation4], 0 }
   0x4   :  { %13 = vsyncpa [#allocation4 + $0x1], 0  ;;  %s566_s9 = smov 0   ;;  %s568_s10 = smov 0  }
   0x5   :  { %s570_s11 = smov 0   ;;  %s572_s12 = smov 0  }
   0x6   :  { %s574_s13 = smov 0   ;;  %s576_s14 = smov 0  }
   0x7 LB: > { %s314_s15 = sadd.s32 4294967295, %s548_s14   ;;  %s315_s16 = sadd.s32 4294967294, %s548_s14   ;;  %s548_s14 = sphi %s576_s14, %s19_s14   ;;  %s544_s13 = sphi %s574_s13, %s729_s13   ;;  %s540_s12 = sphi %s572_s12, %s728_s12   ;;  %s536_s11 = sphi %s570_s11, %s727_s11   ;;  %s532_s10 = sphi %s568_s10, %s726_s10   ;;  %s528_s9 = sphi %s566_s9, %s725_s9  }
   0x8   : > { %p53_p0 = scmp.ne.s32.totalorder %s532_s10, %s528_s9  ;;  %p600_p1 = scmp.eq.s32.totalorder %s314_s15, 0 }
   0x9   : > { %p604_p2 = scmp.eq.s32.totalorder %s314_s15, 1  ;;  %p111_p3 = scmp.eq.s32.totalorder %s315_s16, 1 }
   0xa   : > { %p610_p4 = por %p600_p1, %p53_p0  ;;  %p316_p5 = scmp.ge.s32.totalorder %s548_s14, 1 }
   0xb   : > { %p615_p6 = por %p111_p3, %p53_p0  ;;  %p118_p7 = scmp.lt.s32.totalorder %s548_s14, 3 }
   0xc   : > { %s132_s23 = sshll.u32 %s716_s1, 4  ;;  %p318_p9 = scmp.ge.s32.totalorder %s548_s14, 2  ;;  %s133_s23 = int_to_ptr.hbm [resolvable:$true] %s132_s23 }
   0xd   : > { %p623_p8 = pnand %p316_p5, %p118_p7  ;;  %s550_s25 = smov [#allocation5]  }
   0xe   : > { %s134_s26 = sshll.u32 %s550_s25, 4  ;;  %s28_s27 = sadd.s32 1, %s544_s13  ;;  %s135_s26 = int_to_ptr.vmem [resolvable:$true] %s134_s26 }
   0xf   : > { %p337_p10 = pneg %p623_p8  ;;  %p29_p12 = scmp.ge.s32.totalorder %s28_s27, 2 }
  0x10   : > { %s40_s28 = sadd.s32 1, %s536_s11  ;;  %p47_p13 = scmp.ne.s32.totalorder %s536_s11, %s532_s10 }
  0x11   : > { %p338_p11 = pnand %p337_p10, %p600_p1  ;;  %p48_p0 = scmp.eq.s32.totalorder %s548_s14, 0 }
  0x12   : > { %s731_s27 = smov (%p29_p12, %s28_s27), 0  ;;  %p645_p5 = por %p604_p2, %p47_p13 }
  0x13   : > { %340 = dma.hbm_to_vmem [thread:$0]  (!%p338_p11), %s133_s23, 128, %s135_s26, [#allocation6]  }
  0x14   : > { %p639_p3 = por %p48_p0, %p47_p13  ;;  %s35_s3 = ssub.s32 %s544_s13, %s731_s27 }
  0x15   : > { %p350_p7 = scmp.lt.s32.totalorder %s548_s14, 2  ;;  %p38_p10 = scmp.eq.s32.totalorder %s35_s3, 0 }
  0x16   : > { %s145_s4 = sand.u32 1, %s536_s11   ;;  %s320_s7 = sshll.u32 %s544_s13, 3 }
  0x17   : > { %s319_s5 = sshll.u32 %s145_s4, 3  ;;  %s154_s16 = scalar_lea.hbm %s715_s0, %s320_s7 }
  0x18   : > { %s654_s6 = scalar_select %p38_p10, %s536_s11, %s40_s28  }
  0x19   : > { %s149_s21 = scalar_lea.vmem [#allocation2], %s319_s5  ;;  %s156_s18 = sshll.u32 %s154_s16, 4  ;;  %s157_s18 = int_to_ptr.hbm [resolvable:$true] %s156_s18 }
  0x1a   : > { %s158_s22 = sshll.u32 %s149_s21, 4  ;;  %p342_p2 = pnand %p350_p7, %p639_p3  ;;  %s159_s22 = int_to_ptr.vmem [resolvable:$true] %s158_s22 }
  0x1b   : > { %s146_s23 = scalar_lea.sflag [#allocation3], %s145_s4  ;;  %167 = sbr.rel (%p623_p8) target bundleno = 50 (0x32), region = 28 }
  0x1c   : > { %344 = dma.hbm_to_vmem [thread:$0]  (!%p342_p2), %s157_s18, 128, %s159_s22, %s146_s23  }
  0x1d   : > { %s665_s25 = sand.u32 (!%p623_p8), 1, %s532_s10  }
  0x1e   : > { %s322_s26 = sshll.u32 (!%p623_p8), %s665_s25, 3  ;;  %s170_s28 = scalar_lea.sflag (!%p623_p8), [#allocation3], %s665_s25 }
  0x1f   : > { %s173_s3 = scalar_lea.vmem (!%p623_p8), [#allocation2], %s322_s26 }
  0x20   : > { %515 = dma.done.wait (%p610_p4), %s170_s28, 128  }
  0x21   : > { %517 = vsyncadd (%p610_p4), %s170_s28, 4294967168 }
  0x22   : > { %519 = dma.done.wait (%p600_p1), [#allocation6], 128  }
  0x23   : > { %521 = vsyncadd (%p600_p1), [#allocation6], 4294967168  ;;  %s326_s24 = sshll.u32 %s540_s12, 3  ;;  %v200_v0 = vld [vmem:[%s173_s3] sm:$0xff]  ;;  %v201_v1 = vld [vmem:[#allocation5] sm:$0xff]  ;;  %s199_s7 = scalar_lea.vmem [#allocation7], %s322_s26 }
  0x24   : > { %s217_s5 = scalar_lea.hbm %s717_s2, %s326_s24  ;;  %s219_s8 = sshll.u32 %s199_s7, 4  ;;  %v202_v2 = vmul.f32 5.656854, %v200_v0  ;;  %s220_s8 = int_to_ptr.vmem [resolvable:$true] %s219_s8 }
  0x25   : > { %s221_s19 = sshll.u32 %s217_s5, 4  ;;  %s206_s17 = scalar_lea.sflag [#allocation4], %s665_s25  ;;  %s222_s19 = int_to_ptr.hbm [resolvable:$true] %s221_s19 }
  0x26   : > { %v203_v3 = vadd.f32 %v202_v2, %v201_v1  ;;  %s476_s15 = sshra.s32 %s222_s19, 4  ;;  %s482_s22 = scalar_lea.hbm %s717_s2, 16  ;;  %s477_s15 = int_to_ptr.hbm [resolvable:$true] %s476_s15 }
  0x27   : > { %s478_s16 = scalar_lea.hbm %s477_s15, 8  ;;  %p483_p11 = scmp.lt.s32.totalorder %s477_s15, %s717_s2 }
  0x28   : > { %204 = vst [vmem:[%s199_s7] sm:$0xff] %v203_v3  ;;  %p479_p1 = scmp.ne.s32.totalorder %s477_s15, %s478_s16  ;;  %p484_p12 = scmp.lt.s32.totalorder %s482_s22, %s478_s16 }
  0x2a   : > { %p480_p4 = pnand %p479_p1, %p645_p5  ;;  %p485_p13 = por %p484_p12, %p483_p11 }
  0x2c   : > { %p481_p8 = pneg %p480_p4 }
  0x2e   : > { %p486_p0 = pnand %p485_p13, %p481_p8 }
  0x30   : > { %489 = shalt.err (!%p486_p0)
}
  0x31   : > { %335 = dma.vmem_to_hbm [thread:$0]  (%p645_p5), %s220_s8, 128, %s222_s19, %s206_s17  }
  0x32 PF: > { %s233_s25 = sand.u32 1, %s528_s9   ;;  %p346_p3 = pnand %p318_p9, %p615_p6 }
  0x33   : > { %s234_s26 = scalar_lea.sflag [#allocation4], %s233_s25 }
  0x34   : > { %p347_p7 = pneg %p346_p3 }
  0x36   : > { %523 = dma.done.wait (%p347_p7), %s234_s26, 128  }
  0x37   : > { %525 = vsyncadd (%p347_p7), %s234_s26, 4294967168  ;;  %s19_s14 = sadd.s32 1, %s548_s14   ;;  %s725_s9 = smov %s532_s10 }
  0x38   : > { %p16_p10 = scmp.ge.s32.totalorder %s19_s14, 4   ;;  %s726_s10 = smov %s536_s11 }
  0x39   : > { %s727_s11 = smov %s654_s6  ;;  %s728_s12 = smov %s544_s13 }
  0x3a   : > { %s729_s13 = smov %s731_s27  ;;  %18 = sbr.rel (!%p16_p10) target bundleno = 7 (0x7), region = 78 }
  0x3f   :  { %240 = vsyncpa [#allocation3], 1 }
  0x40   :  { %242 = vsyncpa [#allocation3 + $0x1], 1 }
  0x41   :  { %243 = vsyncpa [#allocation6], 1 }
  0x42   :  { %244 = vsyncpa [#allocation4], 1 }
  0x43   :  { %246 = vsyncpa [#allocation4 + $0x1], 1 }

</bundles_post_ra>
